<compile_context>
chip_gen: v6e
topology: v6e:2x2x1
jax: 0.10.0
libtpu: 0.0.40
codegen_flags: <defaults>
</compile_context>

<pallas_src>
import functools

import jax
import jax.numpy as jnp
from jax import lax
from jax.experimental import pallas as pl
from jax.experimental.pallas import tpu as pltpu

# ----- module hyper-parameters (DEPTH falsy -> 2D path) -----
DEPTH = 0
TANGENT_PATCH = 4
EMB_DIM = 32
IN_CHANNELS = 4

BN_EPS = 1e-5
LEAKY_SLOPE = 0.01  # nn.LeakyReLU() default

_VMEM_LIMIT = 32 * 1024 * 1024  # safe on v5e/v6e (128 MiB) and v7x (64 MiB)


def _pick_tile_m(m):
    """Largest tile along M that keeps blocks (8,128)-legal and divides M."""
    for t in (1024, 512, 256, 128):
        if m % t == 0:
            return t
    return m  # small M: single full-extent block (full dims are always legal)


def stats_kernel(pt_ref, w_ref, b_ref, sum_ref, sumsq_ref):
    """Pass 1: per-channel sum / sum-of-squares of the conv output.

    pt_ref:  (K, tm) bf16   transposed patch tile (lane dim = tm, lane-dense)
    w_ref:   (E, K)  bf16   flattened conv weight (resident, fetched once)
    b_ref:   (E, 1)  f32    conv bias
    sum_ref, sumsq_ref: (E, 1) f32 accumulator outputs (same block every step).
    """
    @pl.when(pl.program_id(0) == 0)
    def _():
        sum_ref[...] = jnp.zeros_like(sum_ref)
        sumsq_ref[...] = jnp.zeros_like(sumsq_ref)

    # Patch embedding "conv" = MXU matmul, f32 accumulation; output is (E, tm).
    y = jnp.dot(w_ref[...], pt_ref[...], preferred_element_type=jnp.float32)
    y = y + b_ref[...]

    # Lane reductions (transposed layout -> reduce over the lane axis).
    sum_ref[...] += jnp.sum(y, axis=1, keepdims=True)
    sumsq_ref[...] += jnp.sum(y * y, axis=1, keepdims=True)


def apply_kernel(pt_ref, w_ref, b_ref, scale_ref, shift_ref, out_ref):
    """Pass 2: recompute the cheap matmul and apply BN affine + LeakyReLU.

    scale = gamma * rsqrt(var + eps), shift = beta - mean * scale  (precomputed).
    out_ref: (E, tm) f32, single lane-dense store per tile.
    """
    y = jnp.dot(w_ref[...], pt_ref[...], preferred_element_type=jnp.float32)
    y = y + b_ref[...]
    z = y * scale_ref[...] + shift_ref[...]
    out_ref[...] = jnp.where(z >= 0, z, LEAKY_SLOPE * z)


@jax.jit
def perspective_patch_forward(x, conv_w, conv_b, gamma, beta):
    """x: (B, C, H, W) float32 (NCHW).  Returns (B, num_patches, EMB_DIM) f32."""
    B, C, H, W = x.shape
    P, E = TANGENT_PATCH, EMB_DIM
    Hp, Wp = H // P, W // P
    Np = Hp * Wp
    K = C * P * P
    M = B * Np

    # --- glue: unfold NCHW into the *transposed* patch matrix (K, M) ---
    # column m = (b, hp, wp) row-major, row k = (c, ph, pw) row-major — matches
    # the PyTorch conv-weight flattening and the .view/.permute output order.
    # The bf16 cast fuses with this transpose under jit (half-size intermediate).
    pt = x.reshape(B, C, Hp, P, Wp, P).transpose(1, 3, 5, 0, 2, 4)
    pt = pt.reshape(K, M).astype(jnp.bfloat16)

    w_t = conv_w.reshape(E, K).astype(jnp.bfloat16)          # (E, K)
    b_col = conv_b.reshape(E, 1).astype(jnp.float32)          # (E, 1)

    tm = _pick_tile_m(M)
    n_tiles = M // tm

    # ---------------- pass 1: per-channel batch statistics ----------------
    sums, sumsqs = pl.pallas_call(
        stats_kernel,
        out_shape=(jax.ShapeDtypeStruct((E, 1), jnp.float32),
                   jax.ShapeDtypeStruct((E, 1), jnp.float32)),
        grid=(n_tiles,),
        in_specs=[
            pl.BlockSpec((K, tm), lambda i: (0, i)),
            pl.BlockSpec((E, K), lambda i: (0, 0)),
            pl.BlockSpec((E, 1), lambda i: (0, 0)),
        ],
        out_specs=(pl.BlockSpec((E, 1), lambda i: (0, 0)),
                   pl.BlockSpec((E, 1), lambda i: (0, 0))),
        compiler_params=pltpu.CompilerParams(
            dimension_semantics=("arbitrary",),  # accumulator across M tiles
            vmem_limit_bytes=_VMEM_LIMIT,
        ),
    )(pt, w_t, b_col)

    # Tiny (E,) finalize: train-mode BatchNorm (biased variance), folded affine.
    mean = sums / M
    var = jnp.maximum(sumsqs / M - mean * mean, 0.0)
    scale = gamma.reshape(E, 1) * lax.rsqrt(var + BN_EPS)
    shift = beta.reshape(E, 1) - mean * scale

    # ------------- pass 2: normalize + affine + LeakyReLU, lane-dense -------------
    z_t = pl.pallas_call(
        apply_kernel,
        out_shape=jax.ShapeDtypeStruct((E, M), jnp.float32),
        grid=(n_tiles,),
        in_specs=[
            pl.BlockSpec((K, tm), lambda i: (0, i)),
            pl.BlockSpec((E, K), lambda i: (0, 0)),
            pl.BlockSpec((E, 1), lambda i: (0, 0)),
            pl.BlockSpec((E, 1), lambda i: (0, 0)),
            pl.BlockSpec((E, 1), lambda i: (0, 0)),
        ],
        out_specs=pl.BlockSpec((E, tm), lambda i: (0, i)),
        compiler_params=pltpu.CompilerParams(
            dimension_semantics=("parallel",),   # independent tiles -> megacore on v7x
            vmem_limit_bytes=_VMEM_LIMIT,
        ),
    )(pt, w_t, b_col, scale, shift)

    # (E, M) -> (B, Np, E): output-layout transpose done once in the wrapper.
    return z_t.reshape(E, B, Np).transpose(1, 2, 0)


def reference_forward(x, conv_w, conv_b, gamma, beta):
    """Pure-JAX f32 reference mirroring the PyTorch forward."""
    B, C, H, W = x.shape
    P, E = TANGENT_PATCH, EMB_DIM
    Hp, Wp = H // P, W // P
    patches = x.reshape(B, C, Hp, P, Wp, P).transpose(0, 2, 4, 1, 3, 5)
    patches = patches.reshape(B * Hp * Wp, C * P * P)
    y = patches @ conv_w.reshape(E, -1).T + conv_b[None, :]
    mean = jnp.mean(y, axis=0, keepdims=True)
    var = jnp.mean((y - mean) ** 2, axis=0, keepdims=True)
    y = (y - mean) / jnp.sqrt(var + BN_EPS)
    y = y * gamma[None, :] + beta[None, :]
    y = jnp.where(y >= 0, y, LEAKY_SLOPE * y)
    return y.reshape(B, Hp * Wp, E)


if __name__ == "__main__":
    key = jax.random.PRNGKey(0)
    k_x, k_w, k_b, k_g, k_be = jax.random.split(key, 5)

    B, C, H, W = 2, IN_CHANNELS, 16, 16
    x = jax.random.normal(k_x, (B, C, H, W), dtype=jnp.float32)

    # Deterministic parameter init (synthetic; shapes from the module __init__).
    fan_in = C * TANGENT_PATCH * TANGENT_PATCH
    bound = 1.0 / (fan_in ** 0.5)
    conv_w = jax.random.uniform(
        k_w, (EMB_DIM, C, TANGENT_PATCH, TANGENT_PATCH),
        minval=-bound, maxval=bound, dtype=jnp.float32)
    conv_b = jax.random.uniform(
        k_b, (EMB_DIM,), minval=-bound, maxval=bound, dtype=jnp.float32)
    # BatchNorm affine params (perturbed from the 1/0 defaults so the affine is real).
    gamma = 1.0 + 0.1 * jax.random.normal(k_g, (EMB_DIM,), dtype=jnp.float32)
    beta = 0.1 * jax.random.normal(k_be, (EMB_DIM,), dtype=jnp.float32)

    out = perspective_patch_forward(x, conv_w, conv_b, gamma, beta)
    out = jax.block_until_ready(out)

    ref = reference_forward(x, conv_w, conv_b, gamma, beta)
    Np = (H // TANGENT_PATCH) * (W // TANGENT_PATCH)
    assert out.shape == (B, Np, EMB_DIM)
    # bf16 patch/weight stream -> relaxed tolerance vs. the f32 reference.
    max_err = float(jnp.max(jnp.abs(out - ref)))
    assert jnp.allclose(out, ref, atol=5e-2, rtol=5e-2), f"max abs err {max_err}"

    print("KERNEL_OK")
</pallas_src>

<mosaic_0001>
module attributes {stable_mosaic.version = 11 : i64} {
  func.func @stats_kernel(%arg0: i32, %arg1: memref<64x32xbf16, #tpu.memory_space<vmem>>, %arg2: memref<32x64xbf16, #tpu.memory_space<vmem>>, %arg3: memref<32x1xf32, #tpu.memory_space<vmem>>, %arg4: memref<32x1xf32, #tpu.memory_space<vmem>>, %arg5: memref<32x1xf32, #tpu.memory_space<vmem>>) attributes {dimension_semantics = [#tpu.dimension_semantics<arbitrary>], iteration_bounds = array<i64: 1>, scalar_prefetch = 0 : i64, scratch_operands = 0 : i64, tpu.core_type = #tpu.core_type<tc>, window_params = [{transform_indices = @transform_0, window_bounds = array<i64: 64, 32>}, {pipeline_mode = #tpu.pipeline_mode<synchronous>, transform_indices = @transform_1, window_bounds = array<i64: 32, 64>}, {pipeline_mode = #tpu.pipeline_mode<synchronous>, transform_indices = @transform_2, window_bounds = array<i64: 32, 1>}, {pipeline_mode = #tpu.pipeline_mode<synchronous>, transform_indices = @transform_3, window_bounds = array<i64: 32, 1>}, {pipeline_mode = #tpu.pipeline_mode<synchronous>, transform_indices = @transform_4, window_bounds = array<i64: 32, 1>}]} {
    %c0_i32 = arith.constant 0 : i32
    %0 = arith.cmpi eq, %arg0, %c0_i32 : i32
    %1 = arith.extui %0 : i1 to i32
    %c0_i32_0 = arith.constant 0 : i32
    %2 = arith.cmpi ne, %1, %c0_i32_0 : i32
    scf.if %2 {
      %cst_16 = arith.constant 0.000000e+00 : f32
      %20 = vector.broadcast %cst_16 : f32 to vector<32x1xf32>
      %c0_17 = arith.constant 0 : index
      %c0_18 = arith.constant 0 : index
      %21 = vector.load %arg4[%c0_17, %c0_18] : memref<32x1xf32, #tpu.memory_space<vmem>>, vector<32x1xf32>
      tpu.vector_store %arg4[%c0_17, %c0_18], %20 {strides = array<i32>} : memref<32x1xf32, #tpu.memory_space<vmem>>, vector<32x1xf32>,
      %cst_19 = arith.constant 0.000000e+00 : f32
      %22 = vector.broadcast %cst_19 : f32 to vector<32x1xf32>
      %c0_20 = arith.constant 0 : index
      %c0_21 = arith.constant 0 : index
      %23 = vector.load %arg5[%c0_20, %c0_21] : memref<32x1xf32, #tpu.memory_space<vmem>>, vector<32x1xf32>
      tpu.vector_store %arg5[%c0_20, %c0_21], %22 {strides = array<i32>} : memref<32x1xf32, #tpu.memory_space<vmem>>, vector<32x1xf32>,
    } else {
    }
    %c0 = arith.constant 0 : index
    %c0_1 = arith.constant 0 : index
    %3 = vector.load %arg2[%c0, %c0_1] : memref<32x64xbf16, #tpu.memory_space<vmem>>, vector<32x64xbf16>
    %c0_2 = arith.constant 0 : index
    %c0_3 = arith.constant 0 : index
    %4 = vector.load %arg1[%c0_2, %c0_3] : memref<64x32xbf16, #tpu.memory_space<vmem>>, vector<64x32xbf16>
    %cst = arith.constant dense<0.000000e+00> : vector<32x32xf32>
    %5 = tpu.matmul %3, %4, %cst {dimension_numbers = #tpu.dot_dimension_numbers<[1], [0], [0], [1], [0, 0, 1, 1], [], []>} : vector<32x64xbf16>, vector<64x32xbf16>, vector<32x32xf32> -> vector<32x32xf32>
    %c0_4 = arith.constant 0 : index
    %c0_5 = arith.constant 0 : index
    %6 = vector.load %arg3[%c0_4, %c0_5] : memref<32x1xf32, #tpu.memory_space<vmem>>, vector<32x1xf32>
    %7 = vector.broadcast %6 : vector<32x1xf32> to vector<32x32xf32>
    %8 = arith.addf %5, %7 : vector<32x32xf32>
    %c0_6 = arith.constant 0 : index
    %c0_7 = arith.constant 0 : index
    %9 = vector.load %arg4[%c0_6, %c0_7] : memref<32x1xf32, #tpu.memory_space<vmem>>, vector<32x1xf32>
    %cst_8 = arith.constant dense<0.000000e+00> : vector<32xf32>
    %10 = vector.multi_reduction <add>, %8, %cst_8 [1] : vector<32x32xf32> to vector<32xf32>
    %11 = vector.shape_cast %10 : vector<32xf32> to vector<32x1xf32>
    %12 = arith.addf %9, %11 : vector<32x1xf32>
    %c0_9 = arith.constant 0 : index
    %c0_10 = arith.constant 0 : index
    %13 = vector.load %arg4[%c0_9, %c0_10] : memref<32x1xf32, #tpu.memory_space<vmem>>, vector<32x1xf32>
    tpu.vector_store %arg4[%c0_9, %c0_10], %12 {strides = array<i32>} : memref<32x1xf32, #tpu.memory_space<vmem>>, vector<32x1xf32>,
    %c0_11 = arith.constant 0 : index
    %c0_12 = arith.constant 0 : index
    %14 = vector.load %arg5[%c0_11, %c0_12] : memref<32x1xf32, #tpu.memory_space<vmem>>, vector<32x1xf32>
    %15 = arith.mulf %8, %8 : vector<32x32xf32>
    %cst_13 = arith.constant dense<0.000000e+00> : vector<32xf32>
    %16 = vector.multi_reduction <add>, %15, %cst_13 [1] : vector<32x32xf32> to vector<32xf32>
    %17 = vector.shape_cast %16 : vector<32xf32> to vector<32x1xf32>
    %18 = arith.addf %14, %17 : vector<32x1xf32>
    %c0_14 = arith.constant 0 : index
    %c0_15 = arith.constant 0 : index
    %19 = vector.load %arg5[%c0_14, %c0_15] : memref<32x1xf32, #tpu.memory_space<vmem>>, vector<32x1xf32>
    tpu.vector_store %arg5[%c0_14, %c0_15], %18 {strides = array<i32>} : memref<32x1xf32, #tpu.memory_space<vmem>>, vector<32x1xf32>,
    return
  }
  func.func @transform_0(%arg0: i32) -> (i32, i32) {
    %c0_i32 = arith.constant 0 : i32
    %c0_i32_0 = arith.constant 0 : i32
    return %c0_i32, %arg0 : i32, i32
  }
  func.func @transform_1(%arg0: i32) -> (i32, i32) {
    %c0_i32 = arith.constant 0 : i32
    %c0_i32_0 = arith.constant 0 : i32
    %c0_i32_1 = arith.constant 0 : i32
    return %c0_i32, %c0_i32_0 : i32, i32
  }
  func.func @transform_2(%arg0: i32) -> (i32, i32) {
    %c0_i32 = arith.constant 0 : i32
    %c0_i32_0 = arith.constant 0 : i32
    %c0_i32_1 = arith.constant 0 : i32
    return %c0_i32, %c0_i32_0 : i32, i32
  }
  func.func @transform_3(%arg0: i32) -> (i32, i32) {
    %c0_i32 = arith.constant 0 : i32
    %c0_i32_0 = arith.constant 0 : i32
    %c0_i32_1 = arith.constant 0 : i32
    return %c0_i32, %c0_i32_0 : i32, i32
  }
  func.func @transform_4(%arg0: i32) -> (i32, i32) {
    %c0_i32 = arith.constant 0 : i32
    %c0_i32_0 = arith.constant 0 : i32
    %c0_i32_1 = arith.constant 0 : i32
    return %c0_i32, %c0_i32_0 : i32, i32
  }
}

module attributes {stable_mosaic.version = 11 : i64} {
  func.func @apply_kernel(%arg0: i32, %arg1: memref<64x32xbf16, #tpu.memory_space<vmem>>, %arg2: memref<32x64xbf16, #tpu.memory_space<vmem>>, %arg3: memref<32x1xf32, #tpu.memory_space<vmem>>, %arg4: memref<32x1xf32, #tpu.memory_space<vmem>>, %arg5: memref<32x1xf32, #tpu.memory_space<vmem>>, %arg6: memref<32x32xf32, #tpu.memory_space<vmem>>) attributes {dimension_semantics = [#tpu.dimension_semantics<parallel>], iteration_bounds = array<i64: 1>, scalar_prefetch = 0 : i64, scratch_operands = 0 : i64, tpu.core_type = #tpu.core_type<tc>, window_params = [{transform_indices = @transform_0, window_bounds = array<i64: 64, 32>}, {pipeline_mode = #tpu.pipeline_mode<synchronous>, transform_indices = @transform_1, window_bounds = array<i64: 32, 64>}, {pipeline_mode = #tpu.pipeline_mode<synchronous>, transform_indices = @transform_2, window_bounds = array<i64: 32, 1>}, {pipeline_mode = #tpu.pipeline_mode<synchronous>, transform_indices = @transform_3, window_bounds = array<i64: 32, 1>}, {pipeline_mode = #tpu.pipeline_mode<synchronous>, transform_indices = @transform_4, window_bounds = array<i64: 32, 1>}, {transform_indices = @transform_5, window_bounds = array<i64: 32, 32>}]} {
    %c0 = arith.constant 0 : index
    %c0_0 = arith.constant 0 : index
    %0 = vector.load %arg2[%c0, %c0_0] : memref<32x64xbf16, #tpu.memory_space<vmem>>, vector<32x64xbf16>
    %c0_1 = arith.constant 0 : index
    %c0_2 = arith.constant 0 : index
    %1 = vector.load %arg1[%c0_1, %c0_2] : memref<64x32xbf16, #tpu.memory_space<vmem>>, vector<64x32xbf16>
    %cst = arith.constant dense<0.000000e+00> : vector<32x32xf32>
    %2 = tpu.matmul %0, %1, %cst {dimension_numbers = #tpu.dot_dimension_numbers<[1], [0], [0], [1], [0, 0, 1, 1], [], []>} : vector<32x64xbf16>, vector<64x32xbf16>, vector<32x32xf32> -> vector<32x32xf32>
    %c0_3 = arith.constant 0 : index
    %c0_4 = arith.constant 0 : index
    %3 = vector.load %arg3[%c0_3, %c0_4] : memref<32x1xf32, #tpu.memory_space<vmem>>, vector<32x1xf32>
    %4 = vector.broadcast %3 : vector<32x1xf32> to vector<32x32xf32>
    %5 = arith.addf %2, %4 : vector<32x32xf32>
    %c0_5 = arith.constant 0 : index
    %c0_6 = arith.constant 0 : index
    %6 = vector.load %arg4[%c0_5, %c0_6] : memref<32x1xf32, #tpu.memory_space<vmem>>, vector<32x1xf32>
    %7 = vector.broadcast %6 : vector<32x1xf32> to vector<32x32xf32>
    %8 = arith.mulf %5, %7 : vector<32x32xf32>
    %c0_7 = arith.constant 0 : index
    %c0_8 = arith.constant 0 : index
    %9 = vector.load %arg5[%c0_7, %c0_8] : memref<32x1xf32, #tpu.memory_space<vmem>>, vector<32x1xf32>
    %10 = vector.broadcast %9 : vector<32x1xf32> to vector<32x32xf32>
    %11 = arith.addf %8, %10 : vector<32x32xf32>
    %cst_9 = arith.constant 0.000000e+00 : f32
    %12 = vector.broadcast %cst_9 : f32 to vector<32x32xf32>
    %13 = arith.cmpf oge, %11, %12 : vector<32x32xf32>
    %cst_10 = arith.constant 0.00999999977 : f32
    %14 = vector.broadcast %cst_10 : f32 to vector<32x32xf32>
    %15 = arith.mulf %14, %11 : vector<32x32xf32>
    %16 = arith.select %13, %11, %15 : vector<32x32xi1>, vector<32x32xf32>
    %c0_11 = arith.constant 0 : index
    %c0_12 = arith.constant 0 : index
    %17 = vector.load %arg6[%c0_11, %c0_12] : memref<32x32xf32, #tpu.memory_space<vmem>>, vector<32x32xf32>
    tpu.vector_store %arg6[%c0_11, %c0_12], %16 {strides = array<i32>} : memref<32x32xf32, #tpu.memory_space<vmem>>, vector<32x32xf32>,
    return
  }
  func.func @transform_0(%arg0: i32) -> (i32, i32) {
    %c0_i32 = arith.constant 0 : i32
    %c0_i32_0 = arith.constant 0 : i32
    return %c0_i32, %arg0 : i32, i32
  }
  func.func @transform_1(%arg0: i32) -> (i32, i32) {
    %c0_i32 = arith.constant 0 : i32
    %c0_i32_0 = arith.constant 0 : i32
    %c0_i32_1 = arith.constant 0 : i32
    return %c0_i32, %c0_i32_0 : i32, i32
  }
  func.func @transform_2(%arg0: i32) -> (i32, i32) {
    %c0_i32 = arith.constant 0 : i32
    %c0_i32_0 = arith.constant 0 : i32
    %c0_i32_1 = arith.constant 0 : i32
    return %c0_i32, %c0_i32_0 : i32, i32
  }
  func.func @transform_3(%arg0: i32) -> (i32, i32) {
    %c0_i32 = arith.constant 0 : i32
    %c0_i32_0 = arith.constant 0 : i32
    %c0_i32_1 = arith.constant 0 : i32
    return %c0_i32, %c0_i32_0 : i32, i32
  }
  func.func @transform_4(%arg0: i32) -> (i32, i32) {
    %c0_i32 = arith.constant 0 : i32
    %c0_i32_0 = arith.constant 0 : i32
    %c0_i32_1 = arith.constant 0 : i32
    return %c0_i32, %c0_i32_0 : i32, i32
  }
  func.func @transform_5(%arg0: i32) -> (i32, i32) {
    %c0_i32 = arith.constant 0 : i32
    %c0_i32_0 = arith.constant 0 : i32
    return %c0_i32, %arg0 : i32, i32
  }
}

</mosaic_0001>

<bundles_post_ra>
// kernel: perspective_patch_forward.3
= control target key start
LH: loop header
LB: loop body
LE: loop exit
PB: predicated region body
PF: predicated region fallthrough
CT: control target
= control target key end

     0   :  { %v259_v1 = vmov 0   ;;  %vm91_vm0 = vcmask 523264   ;;  %vm215_vm1 = vcmask 261120   ;;  %s362_s0 = inlined_call_operand.vmem [shape: bf16[64,32], index: 0, kind: input, shape index: {}]   ;;  %s363_s1 = inlined_call_operand.vmem [shape: bf16[32,64], index: 1, kind: input, shape index: {}]   ;;  %s364_s2 = inlined_call_operand.vmem [shape: f32[32,1], index: 2, kind: input, shape index: {}]   ;;  %s365_s3 = inlined_call_operand.vmem [shape: f32[32,1], index: 3, kind: input, shape index: {}]   ;;  %s366_s4 = inlined_call_operand.vmem [shape: f32[32,1], index: 4, kind: input, shape index: {}]   ;;  %s367_s5 = inlined_call_operand.vmem [shape: f32[32,32], index: 5, kind: output, shape index: {}]  }
   0x1   :  { %v253_v0 = vld [vmem:[%s362_s0 + $0x18] sm:$0xff]   ;;  %252 = vset.pattern.permute.xlu1 %v259_v1  ;;  %251 = vset.pattern.permute.xlu0 %v259_v1  ;;  %v254_v2 = vld [vmem:[%s362_s0 + $0x10] sm:$0xff]   ;;  %v255_v3 = vld [vmem:[%s362_s0 + $0x8] sm:$0xff]  }
   0x2   :  { %238 = vmatprep.subr.bf16.mxu0 %v253_v0  ;;  %v257_v4 = vld [vmem:[%s363_s1] sm:$0xff]   ;;  %v35_v5 = vld [vmem:[%s364_s2 + $0x10] sm:$0xff]  ;;  %v36_v8 = vld [vmem:[%s364_s2 + $0x18] sm:$0xff] }
   0x3   :  { %239 = vmatpush3.bf16.msra.mxu0 %v253_v0  ;;  %246 = vmatprep.mubr.msk.bf16.mxu0 %vm91_vm0, %v257_v4  ;;  %v33_v6 = vld [vmem:[%s364_s2] sm:$0xff]  ;;  %v34_v9 = vld [vmem:[%s364_s2 + $0x8] sm:$0xff]  ;;  %v150_v13 = vld [vmem:[%s365_s3 + $0x18] sm:$0xff] }
   0x4   :  { %240 = vmatprep.subr.bf16.mxu0 %v254_v2  ;;  %49 = vperm.xlu1 %252, %v35_v5   ;;  %v256_v7 = vld [vmem:[%s362_s0] sm:$0xff]   ;;  %v148_v10 = vld [vmem:[%s365_s3 + $0x8] sm:$0xff]  ;;  %v149_v14 = vld [vmem:[%s365_s3 + $0x10] sm:$0xff] }
   0x5   :  { %39 = vperm.xlu0 %251, %v33_v6   ;;  %v147_v11 = vld [vmem:[%s365_s3] sm:$0xff]  ;;  %v258_v12 = vld [vmem:[%s363_s1 + $0x8] sm:$0xff]   ;;  %v178_v17 = vld [vmem:[%s366_s4 + $0x18] sm:$0xff] }
   0x6   :  { %v176_v15 = vld [vmem:[%s366_s4 + $0x8] sm:$0xff]  ;;  %v175_v16 = vld [vmem:[%s366_s4] sm:$0xff]  ;;  %v177_v18 = vld [vmem:[%s366_s4 + $0x10] sm:$0xff] }
   0x7   :  { %241 = vmatpush3.bf16.msra.mxu0 %v254_v2 }
   0x8   :  { %242 = vmatprep.subr.bf16.mxu0 %v255_v3  ;;  %54 = vperm.xlu1 %252, %v36_v8  }
   0x9   :  { %44 = vperm.xlu0 %251, %v34_v9  }
   0xb   :  { %243 = vmatpush3.bf16.msra.mxu0 %v255_v3 }
   0xc   :  { %244 = vmatprep.subr.bf16.mxu0 %v256_v7  ;;  %158 = vperm.xlu1 %252, %v148_v10  }
   0xd   :  { %153 = vperm.xlu0 %251, %v147_v11  }
   0xf   :  { %245 = vmatpush3.bf16.msra.mxu0 %v256_v7 }
  0x10   :  { %168 = vperm.xlu1 %252, %v150_v13  }
  0x11   :  { %163 = vperm.xlu0 %251, %v149_v14  }
  0x12   :  { %247 = vmatmul.mubr.msk.bf16.vlgmr.msra.gmra.mxu0 %vm91_vm0, %v258_v12 }
  0x14   :  { %186 = vperm.xlu1 %252, %v176_v15  }
  0x15   :  { %181 = vperm.xlu0 %251, %v175_v16  }
  0x18   :  { %196 = vperm.xlu1 %252, %v178_v17  }
  0x19   :  { %191 = vperm.xlu0 %251, %v177_v18  }
  0x7f   :  { %v50_v20 = vpop.permute.xlu1 %49 }
  0x80   :  { %v40_v19 = vpop.permute.xlu0 %39 }
  0x83   :  { %v55_v22 = vpop.permute.xlu1 %54 }
  0x84   :  { %v45_v21 = vpop.permute.xlu0 %44 }
  0x87   :  { %v159_v24 = vpop.permute.xlu1 %158 }
  0x88   :  { %v154_v23 = vpop.permute.xlu0 %153 }
  0x8b   :  { %v169_v26 = vpop.permute.xlu1 %168 }
  0x8c   :  { %v164_v25 = vpop.permute.xlu0 %163 }
  0x8f   :  { %v187_v30 = vpop.permute.xlu1 %186 }
  0x90   :  { %v182_v27 = vpop.permute.xlu0 %181 }
  0x93   :  { %v197_v43 = vpop.permute.xlu1 %196 }
  0x94   :  { %v192_v34 = vpop.permute.xlu0 %191 }
  0xd2   :  { %v248_v28 = vpop.f32.mrf.mxu0 }
  0xd3   :  { %v141_v29 = vadd.f32 %v248_v28, %v50_v20 }
  0xd4   :  { %v132_v31 = vpop.f32.mrf.mxu0 }
  0xd5   :  { %v173_v32 = vmul.f32 %v164_v25, %v141_v29  ;;  %v133_v33 = vadd.f32 %v132_v31, %v40_v19 }
  0xd6   :  { %v249_v35 = vpop.f32.mrf.mxu0 }
  0xd7   :  { %v201_v36 = vadd.f32 %v192_v34, %v173_v32  ;;  %v171_v37 = vmul.f32 %v154_v23, %v133_v33  ;;  %v144_v38 = vadd.f32 %v249_v35, %v55_v22 }
  0xd8   :  { %v135_v39 = vpop.f32.mrf.mxu0 }
  0xd9   :  { %vm205_vm2 = vcmp.ge.f32.partialorder %v201_v36, 0.0  ;;  %v209_v40 = vmul.f32 0.01, %v201_v36  ;;  %v199_v41 = vadd.f32 %v182_v27, %v171_v37  ;;  %v174_v42 = vmul.f32 %v169_v26, %v144_v38 }
  0xda   :  { %v136_v44 = vadd.f32 %v135_v39, %v45_v21 }
  0xdb   :  { %v213_v45 = vsel %vm205_vm2, %v201_v36, %v209_v40  ;;  %vm203_vm3 = vcmp.ge.f32.partialorder %v199_v41, 0.0  ;;  %v207_v46 = vmul.f32 0.01, %v199_v41  ;;  %v202_v47 = vadd.f32 %v197_v43, %v174_v42 }
  0xdc   :  { %218 = vst.msk [vmem:[%s367_s5 + $0x10] sm:$0xff] %vm215_vm1, %v213_v45  ;;  %v172_v48 = vmul.f32 %v159_v24, %v136_v44 }
  0xdd   :  { %v211_v49 = vsel %vm203_vm3, %v199_v41, %v207_v46  ;;  %vm206_vm4 = vcmp.ge.f32.partialorder %v202_v47, 0.0  ;;  %v210_v50 = vmul.f32 0.01, %v202_v47 }
  0xde   :  { %216 = vst.msk [vmem:[%s367_s5] sm:$0xff] %vm215_vm1, %v211_v49  ;;  %v200_v51 = vadd.f32 %v187_v30, %v172_v48 }
  0xdf   :  { %v214_v52 = vsel %vm206_vm4, %v202_v47, %v210_v50 }
  0xe0   :  { %219 = vst.msk [vmem:[%s367_s5 + $0x18] sm:$0xff] %vm215_vm1, %v214_v52  ;;  %vm204_vm5 = vcmp.ge.f32.partialorder %v200_v51, 0.0  ;;  %v208_v53 = vmul.f32 0.01, %v200_v51 }
  0xe2   :  { %v212_v54 = vsel %vm204_vm5, %v200_v51, %v208_v53 }
  0xe3   :  { %217 = vst.msk [vmem:[%s367_s5 + $0x8] sm:$0xff] %vm215_vm1, %v212_v54 }

// kernel: perspective_patch_forward.2
= control target key start
LH: loop header
LB: loop body
LE: loop exit
PB: predicated region body
PF: predicated region fallthrough
CT: control target
= control target key end

     0   :  { %v254_v1 = vmov 0   ;;  %vm100_vm0 = vcmask 523264   ;;  %vm21_vm1 = vcmask 7168   ;;  %v255_v11 = vmov 0.0   ;;  %s409_s0 = inlined_call_operand.vmem [shape: bf16[64,32], index: 0, kind: input, shape index: {}]   ;;  %s410_s1 = inlined_call_operand.vmem [shape: bf16[32,64], index: 1, kind: input, shape index: {}]   ;;  %s411_s2 = inlined_call_operand.vmem [shape: f32[32,1], index: 2, kind: input, shape index: {}]   ;;  %s412_s3 = inlined_call_operand.vmem [shape: f32[32,1], index: 3, kind: output, shape index: {0}]   ;;  %s413_s4 = inlined_call_operand.vmem [shape: f32[32,1], index: 4, kind: output, shape index: {1}]  }
   0x1   :  { %v248_v0 = vld [vmem:[%s409_s0 + $0x18] sm:$0xff]   ;;  %247 = vset.pattern.permute.xlu1 %v254_v1  ;;  %246 = vset.pattern.permute.xlu0 %v254_v1  ;;  %v249_v2 = vld [vmem:[%s409_s0 + $0x10] sm:$0xff]   ;;  %v250_v3 = vld [vmem:[%s409_s0 + $0x8] sm:$0xff]   ;;  %24 = vst.msk [vmem:[%s412_s3 + $0x10] sm:$0xff] %vm21_vm1, %v255_v11  ;;  %vm160_vm2 = vcmask 261120  }
   0x2   :  { %232 = vmatprep.subr.bf16.mxu0 %v248_v0  ;;  %v252_v4 = vld [vmem:[%s410_s1] sm:$0xff]   ;;  %v44_v5 = vld [vmem:[%s411_s2 + $0x10] sm:$0xff]  ;;  %v45_v8 = vld [vmem:[%s411_s2 + $0x18] sm:$0xff]  ;;  %22 = vst.msk [vmem:[%s412_s3] sm:$0xff] %vm21_vm1, %v255_v11 }
   0x3   :  { %233 = vmatpush3.bf16.msra.mxu0 %v248_v0  ;;  %240 = vmatprep.mubr.msk.bf16.mxu0 %vm100_vm0, %v252_v4  ;;  %v42_v6 = vld [vmem:[%s411_s2] sm:$0xff]  ;;  %v43_v9 = vld [vmem:[%s411_s2 + $0x8] sm:$0xff]  ;;  %23 = vst.msk [vmem:[%s412_s3 + $0x8] sm:$0xff] %vm21_vm1, %v255_v11  ;;  %25 = vst.msk [vmem:[%s412_s3 + $0x18] sm:$0xff] %vm21_vm1, %v255_v11 }
   0x4   :  { %234 = vmatprep.subr.bf16.mxu0 %v249_v2  ;;  %58 = vperm.xlu1 %247, %v44_v5   ;;  %v251_v7 = vld [vmem:[%s409_s0] sm:$0xff]   ;;  %v253_v10 = vld [vmem:[%s410_s1 + $0x8] sm:$0xff]   ;;  %26 = vst.msk [vmem:[%s413_s4] sm:$0xff] %vm21_vm1, %v255_v11  ;;  %27 = vst.msk [vmem:[%s413_s4 + $0x8] sm:$0xff] %vm21_vm1, %v255_v11 }
   0x5   :  { %48 = vperm.xlu0 %246, %v42_v6   ;;  %28 = vst.msk [vmem:[%s413_s4 + $0x10] sm:$0xff] %vm21_vm1, %v255_v11  ;;  %29 = vst.msk [vmem:[%s413_s4 + $0x18] sm:$0xff] %vm21_vm1, %v255_v11 }
   0x7   :  { %235 = vmatpush3.bf16.msra.mxu0 %v249_v2 }
   0x8   :  { %236 = vmatprep.subr.bf16.mxu0 %v250_v3  ;;  %63 = vperm.xlu1 %247, %v45_v8   ;;  %v158_v36 = vld [vmem:[%s412_s3 + $0x10] sm:$0xff] }
   0x9   :  { %53 = vperm.xlu0 %246, %v43_v9   ;;  %v156_v40 = vld [vmem:[%s412_s3] sm:$0xff] }
   0xa   :  { %v157_v45 = vld [vmem:[%s412_s3 + $0x8] sm:$0xff]  ;;  %v159_v46 = vld [vmem:[%s412_s3 + $0x18] sm:$0xff] }
   0xb   :  { %237 = vmatpush3.bf16.msra.mxu0 %v250_v3  ;;  %v182_v39 = vld [vmem:[%s413_s4] sm:$0xff]  ;;  %v183_v52 = vld [vmem:[%s413_s4 + $0x8] sm:$0xff] }
   0xc   :  { %238 = vmatprep.subr.bf16.mxu0 %v251_v7  ;;  %v184_v51 = vld [vmem:[%s413_s4 + $0x10] sm:$0xff]  ;;  %v185_v57 = vld [vmem:[%s413_s4 + $0x18] sm:$0xff] }
   0xf   :  { %239 = vmatpush3.bf16.msra.mxu0 %v251_v7 }
  0x12   :  { %241 = vmatmul.mubr.msk.bf16.vlgmr.msra.gmra.mxu0 %vm100_vm0, %v253_v10 }
  0x7f   :  { %v59_v12 = vpop.permute.xlu1 %58 }
  0x80   :  { %v49_v13 = vpop.permute.xlu0 %48 }
  0x83   :  { %v64_v20 = vpop.permute.xlu1 %63 }
  0x84   :  { %v54_v22 = vpop.permute.xlu0 %53 }
  0xd2   :  { %v242_v14 = vpop.f32.mrf.mxu0 }
  0xd3   :  { %v150_v15 = vadd.f32 %v242_v14, %v59_v12 }
  0xd4   :  { %v141_v16 = vpop.f32.mrf.mxu0 }
  0xd5   :  { %v142_v17 = vadd.f32 %v141_v16, %v49_v13  ;;  %v167_v18 = vsel %vm160_vm2, %v150_v15, 0.0  ;;  %v188_v30 = vmul.f32 %v150_v15, %v150_v15 }
  0xd6   :  { %168 = vadd.xlane.f32.xlu0 %v167_v18  ;;  %v243_v19 = vpop.f32.mrf.mxu0 }
  0xd7   :  { %v186_v21 = vmul.f32 %v142_v17, %v142_v17  ;;  %v153_v24 = vadd.f32 %v243_v19, %v64_v20  ;;  %v161_v27 = vsel %vm160_vm2, %v142_v17, 0.0  ;;  %v196_v32 = vsel %vm160_vm2, %v188_v30, 0.0 }
  0xd8   :  { %v144_v23 = vpop.f32.mrf.mxu0 }
  0xd9   :  { %v145_v25 = vadd.f32 %v144_v23, %v54_v22  ;;  %v190_v26 = vsel %vm160_vm2, %v186_v21, 0.0  ;;  %v170_v29 = vsel %vm160_vm2, %v153_v24, 0.0  ;;  %v189_v34 = vmul.f32 %v153_v24, %v153_v24 }
  0xda   :  { %191 = vadd.xlane.f32.xlu1 %v190_v26  ;;  %162 = vadd.xlane.f32.xlu0 %v161_v27 }
  0xdb   :  { %v164_v28 = vsel %vm160_vm2, %v145_v25, 0.0  ;;  %v187_v31 = vmul.f32 %v145_v25, %v145_v25  ;;  %v199_v35 = vsel %vm160_vm2, %v189_v34, 0.0 }
  0xdd   :  { %v193_v33 = vsel %vm160_vm2, %v187_v31, 0.0 }
  0xde   :  { %165 = vadd.xlane.f32.xlu1 %v164_v28  ;;  %171 = vadd.xlane.f32.xlu0 %v170_v29 }
  0xe2   :  { %197 = vadd.xlane.f32.xlu1 %v196_v32  ;;  %194 = vadd.xlane.f32.xlu0 %v193_v33 }
  0xe6   :  { %200 = vadd.xlane.f32.xlu0 %v199_v35 }
 0x15f   :  { %v169_v37 = vpop.xlane.xlu0 %168 }
 0x160   :  { %v175_v38 = vadd.f32 %v169_v37, %v158_v36 }
 0x162   :  { %180 = vst.msk [vmem:[%s412_s3 + $0x10] sm:$0xff] %vm21_vm1, %v175_v38 }
 0x163   :  { %v192_v41 = vpop.xlane.xlu1 %191  ;;  %v163_v42 = vpop.xlane.xlu0 %162 }
 0x164   :  { %v202_v43 = vadd.f32 %v192_v41, %v182_v39  ;;  %v173_v44 = vadd.f32 %v163_v42, %v156_v40 }
 0x166   :  { %206 = vst.msk [vmem:[%s413_s4] sm:$0xff] %vm21_vm1, %v202_v43  ;;  %178 = vst.msk [vmem:[%s412_s3] sm:$0xff] %vm21_vm1, %v173_v44 }
 0x167   :  { %v166_v47 = vpop.xlane.xlu1 %165  ;;  %v172_v48 = vpop.xlane.xlu0 %171 }
 0x168   :  { %v174_v49 = vadd.f32 %v166_v47, %v157_v45  ;;  %v176_v50 = vadd.f32 %v172_v48, %v159_v46 }
 0x16a   :  { %179 = vst.msk [vmem:[%s412_s3 + $0x8] sm:$0xff] %vm21_vm1, %v174_v49  ;;  %181 = vst.msk [vmem:[%s412_s3 + $0x18] sm:$0xff] %vm21_vm1, %v176_v50 }
 0x16b   :  { %v198_v53 = vpop.xlane.xlu1 %197  ;;  %v195_v54 = vpop.xlane.xlu0 %194 }
 0x16c   :  { %v204_v55 = vadd.f32 %v198_v53, %v184_v51  ;;  %v203_v56 = vadd.f32 %v195_v54, %v183_v52 }
 0x16e   :  { %208 = vst.msk [vmem:[%s413_s4 + $0x10] sm:$0xff] %vm21_vm1, %v204_v55  ;;  %207 = vst.msk [vmem:[%s413_s4 + $0x8] sm:$0xff] %vm21_vm1, %v203_v56 }
 0x16f   :  { %v201_v58 = vpop.xlane.xlu0 %200 }
 0x170   :  { %v205_v59 = vadd.f32 %v201_v58, %v185_v57 }
 0x172   :  { %209 = vst.msk [vmem:[%s413_s4 + $0x18] sm:$0xff] %vm21_vm1, %v205_v59 }

</bundles_post_ra>
